<compile_context>
chip_gen: v7x
topology: tpu7x:2x2x1
jax: 0.10.0
libtpu: 0.0.40
codegen_flags: <defaults>
</compile_context>

<pallas_src>
import functools

import jax
import jax.numpy as jnp
import numpy as np
from jax.experimental import pallas as pl
from jax.experimental.pallas import tpu as pltpu

# Per-grid-step working-set target (already counts double buffering); kept well
# under the scoped-VMEM limit we request below so it is safe on v5e/v6e/v7x.
_VMEM_BUDGET_BYTES = 20 * 1024 * 1024
_VMEM_LIMIT_BYTES = 48 * 1024 * 1024


def _make_sdpa_kernel(has_bias, emit_scores):
    """Builds a kernel variant with/without bias input and scores output."""

    def kernel(scale_ref, *refs):
        idx = 0
        q_ref = refs[idx]; idx += 1           # (B, Lq, Dk)
        k_ref = refs[idx]; idx += 1           # (B, Dk, Lk)
        v_ref = refs[idx]; idx += 1           # (B, Lk, Dv)
        bias_ref = None
        if has_bias:
            bias_ref = refs[idx]; idx += 1    # (B, Lq, Lk)
        out_ref = refs[idx]; idx += 1         # (B, Lq, Dv)
        attn_ref = refs[idx]; idx += 1        # (B, Lq, Lk)
        scores_ref = refs[idx] if emit_scores else None

        q = q_ref[...]
        k = k_ref[...]
        v = v_ref[...]
        scale = scale_ref[0]

        # attn_scores = q @ k * scale (+ prev + attn_mask + key_padding_mask)
        scores = jnp.einsum("bqd,bdk->bqk", q, k,
                            preferred_element_type=jnp.float32) * scale
        if has_bias:
            scores = scores + bias_ref[...].astype(jnp.float32)
        if emit_scores:
            scores_ref[...] = scores.astype(scores_ref.dtype)

        # softmax over seq_len (kept in f32)
        m = jnp.max(scores, axis=-1, keepdims=True)
        e = jnp.exp(scores - m)
        denom = jnp.sum(e, axis=-1, keepdims=True)
        attn = e * pl.reciprocal(denom, approx=False)
        attn_ref[...] = attn.astype(attn_ref.dtype)

        # output = attn @ v  (probabilities cast to v's dtype -> bf16 MXU path
        # when inputs are bf16; accumulation stays f32)
        out = jnp.einsum("bqk,bkd->bqd", attn.astype(v.dtype), v,
                         preferred_element_type=jnp.float32)
        out_ref[...] = out.astype(out_ref.dtype)

    return kernel


def _pick_block_bh(bh, q_len, seq_len, d_k, d_v, itemsize, has_bias,
                   emit_scores):
    """Largest divisor of bh that fits the VMEM budget, preferring >=2 steps."""
    per = (q_len * d_k + d_k * seq_len + seq_len * d_v
           + q_len * d_v + q_len * seq_len)          # q, k, v, out, attn
    if has_bias:
        per += q_len * seq_len
    if emit_scores:
        per += q_len * seq_len
    # f32 worst case in-kernel, x2 for pipeline double buffering.
    per_bytes = per * max(itemsize, 4) * 2
    divisors = [b for b in range(1, bh + 1) if bh % b == 0]
    fitting = [b for b in divisors if b * per_bytes <= _VMEM_BUDGET_BYTES] or [1]
    multi = [b for b in fitting if bh // b >= 2]     # keep both v7x TCs busy
    return max(multi) if multi else max(fitting)


@functools.partial(jax.jit, static_argnames=("res_attention",))
def scaled_dot_product_attention(q, k, v, scale, prev=None,
                                 key_padding_mask=None, attn_mask=None,
                                 res_attention=False):
    """Pallas equivalent of _ScaledDotProductAttention.forward (dropout p=0)."""
    bs, n_heads, q_len, d_k = q.shape
    seq_len = k.shape[-1]
    d_v = v.shape[-1]
    bh = bs * n_heads

    has_bias = (prev is not None or attn_mask is not None
                or key_padding_mask is not None)
    emit_scores = bool(res_attention)

    # ---- glue: fold prev / attn_mask / key_padding_mask into an additive bias
    bias_f = None
    if has_bias:
        bias = jnp.zeros((bs, n_heads, q_len, seq_len), jnp.float32)
        if prev is not None:
            bias = bias + prev.astype(jnp.float32)
        if attn_mask is not None:
            if attn_mask.dtype == jnp.bool_:
                bias = bias + jnp.where(attn_mask, -jnp.inf, 0.0)
            else:
                bias = bias + attn_mask.astype(jnp.float32)
        if key_padding_mask is not None:
            kp = key_padding_mask[:, None, None, :]  # [bs,1,1,seq_len]
            bias = bias + jnp.where(kp, -jnp.inf, 0.0)
        # Stream at input precision (halves bytes for bf16 nets); the add is
        # done in f32 inside the kernel, so softmax accuracy is unchanged.
        bias_dtype = jnp.float32 if q.dtype == jnp.float32 else jnp.bfloat16
        bias_f = bias.astype(bias_dtype).reshape(bh, q_len, seq_len)

    qf = q.reshape(bh, q_len, d_k)
    kf = k.reshape(bh, d_k, seq_len)
    vf = v.reshape(bh, seq_len, d_v)
    scale_arr = jnp.asarray(scale, jnp.float32).reshape(1)

    block_bh = _pick_block_bh(bh, q_len, seq_len, d_k, d_v, q.dtype.itemsize,
                              has_bias, emit_scores)
    grid = (bh // block_bh,)

    in_specs = [
        pl.BlockSpec(memory_space=pltpu.MemorySpace.SMEM),             # scale
        pl.BlockSpec((block_bh, q_len, d_k), lambda i: (i, 0, 0)),     # q
        pl.BlockSpec((block_bh, d_k, seq_len), lambda i: (i, 0, 0)),   # k
        pl.BlockSpec((block_bh, seq_len, d_v), lambda i: (i, 0, 0)),   # v
    ]
    inputs = [scale_arr, qf, kf, vf]
    if has_bias:
        in_specs.append(
            pl.BlockSpec((block_bh, q_len, seq_len), lambda i: (i, 0, 0)))
        inputs.append(bias_f)

    out_shapes = [
        jax.ShapeDtypeStruct((bh, q_len, d_v), q.dtype),
        jax.ShapeDtypeStruct((bh, q_len, seq_len), q.dtype),
    ]
    out_specs = [
        pl.BlockSpec((block_bh, q_len, d_v), lambda i: (i, 0, 0)),
        pl.BlockSpec((block_bh, q_len, seq_len), lambda i: (i, 0, 0)),
    ]
    if emit_scores:
        out_shapes.append(jax.ShapeDtypeStruct((bh, q_len, seq_len), q.dtype))
        out_specs.append(
            pl.BlockSpec((block_bh, q_len, seq_len), lambda i: (i, 0, 0)))

    results = pl.pallas_call(
        _make_sdpa_kernel(has_bias, emit_scores),
        out_shape=tuple(out_shapes),
        grid_spec=pltpu.PrefetchScalarGridSpec(
            num_scalar_prefetch=0,
            grid=grid,
            in_specs=in_specs,
            out_specs=out_specs,
        ),
        compiler_params=pltpu.CompilerParams(
            dimension_semantics=("parallel",),
            vmem_limit_bytes=_VMEM_LIMIT_BYTES,
        ),
    )(*inputs)

    if emit_scores:
        out, attn, scores = results
    else:
        out, attn = results

    out = out.reshape(bs, n_heads, q_len, d_v)
    attn = attn.reshape(bs, n_heads, q_len, seq_len)
    if res_attention:
        scores = scores.reshape(bs, n_heads, q_len, seq_len)
        return out, attn, scores
    return out, attn


def _reference(q, k, v, scale, prev=None, key_padding_mask=None,
               attn_mask=None):
    s = jnp.einsum("bhqd,bhdk->bhqk", q, k) * scale
    if prev is not None:
        s = s + prev
    if attn_mask is not None:
        if attn_mask.dtype == jnp.bool_:
            s = jnp.where(attn_mask, -jnp.inf, s)
        else:
            s = s + attn_mask
    if key_padding_mask is not None:
        s = jnp.where(key_padding_mask[:, None, None, :], -jnp.inf, s)
    a = jax.nn.softmax(s, axis=-1)
    o = jnp.einsum("bhqk,bhkd->bhqd", a, v)
    return o, a, s


if __name__ == "__main__":
    # Module config: d_model=32, n_heads=4 -> head_dim=8, lsa=False (scale fixed)
    d_model, n_heads = 32, 4
    head_dim = d_model // n_heads
    scale = head_dim ** (-0.5)          # deterministic "parameter" init
    bs, q_len, seq_len, d_v = 2, 8, 8, head_dim

    key = jax.random.PRNGKey(0)
    kq, kk, kv, kp = jax.random.split(key, 4)
    q = jax.random.normal(kq, (bs, n_heads, q_len, head_dim), jnp.float32)
    k = jax.random.normal(kk, (bs, n_heads, head_dim, seq_len), jnp.float32)
    v = jax.random.normal(kv, (bs, n_heads, seq_len, d_v), jnp.float32)
    prev = 0.1 * jax.random.normal(kp, (bs, n_heads, q_len, seq_len),
                                   jnp.float32)

    # Variant 1: residual attention with a prev bias (bias streamed, 3 outputs).
    out, attn, scores = scaled_dot_product_attention(
        q, k, v, scale, prev=prev, res_attention=True)
    jax.block_until_ready((out, attn, scores))
    ro, ra, rs = _reference(q, k, v, scale, prev=prev)
    np.testing.assert_allclose(np.asarray(out), np.asarray(ro),
                               atol=1e-5, rtol=1e-5)
    np.testing.assert_allclose(np.asarray(attn), np.asarray(ra),
                               atol=1e-5, rtol=1e-5)
    np.testing.assert_allclose(np.asarray(scores), np.asarray(rs),
                               atol=1e-5, rtol=1e-5)

    # Variant 2: no bias / masks, res_attention=False (no bias stream, no
    # scores writeback).
    out2, attn2 = scaled_dot_product_attention(q, k, v, scale,
                                               res_attention=False)
    jax.block_until_ready((out2, attn2))
    ro2, ra2, _ = _reference(q, k, v, scale)
    np.testing.assert_allclose(np.asarray(out2), np.asarray(ro2),
                               atol=1e-5, rtol=1e-5)
    np.testing.assert_allclose(np.asarray(attn2), np.asarray(ra2),
                               atol=1e-5, rtol=1e-5)

    print("KERNEL_OK")
</pallas_src>

<mosaic_0001>
module attributes {stable_mosaic.version = 11 : i64} {
  func.func @kernel(%arg0: i32, %arg1: memref<1xf32, #tpu.memory_space<smem>>, %arg2: memref<4x8x8xf32, #tpu.memory_space<vmem>>, %arg3: memref<4x8x8xf32, #tpu.memory_space<vmem>>, %arg4: memref<4x8x8xf32, #tpu.memory_space<vmem>>, %arg5: memref<4x8x8xf32, #tpu.memory_space<vmem>>, %arg6: memref<4x8x8xf32, #tpu.memory_space<vmem>>, %arg7: memref<4x8x8xf32, #tpu.memory_space<vmem>>, %arg8: memref<4x8x8xf32, #tpu.memory_space<vmem>>) attributes {dimension_semantics = [#tpu.dimension_semantics<parallel>], iteration_bounds = array<i64: 2>, scalar_prefetch = 0 : i64, scratch_operands = 0 : i64, tpu.core_type = #tpu.core_type<tc>, window_params = [{transform_indices = @transform_0, window_bounds = array<i64: 1>}, {transform_indices = @transform_1, window_bounds = array<i64: 4, 8, 8>}, {transform_indices = @transform_2, window_bounds = array<i64: 4, 8, 8>}, {transform_indices = @transform_3, window_bounds = array<i64: 4, 8, 8>}, {transform_indices = @transform_4, window_bounds = array<i64: 4, 8, 8>}, {transform_indices = @transform_5, window_bounds = array<i64: 4, 8, 8>}, {transform_indices = @transform_6, window_bounds = array<i64: 4, 8, 8>}, {transform_indices = @transform_7, window_bounds = array<i64: 4, 8, 8>}]} {
    %c0 = arith.constant 0 : index
    %c0_0 = arith.constant 0 : index
    %c0_1 = arith.constant 0 : index
    %0 = vector.load %arg2[%c0, %c0_0, %c0_1] : memref<4x8x8xf32, #tpu.memory_space<vmem>>, vector<4x8x8xf32>
    %c0_2 = arith.constant 0 : index
    %c0_3 = arith.constant 0 : index
    %c0_4 = arith.constant 0 : index
    %1 = vector.load %arg3[%c0_2, %c0_3, %c0_4] : memref<4x8x8xf32, #tpu.memory_space<vmem>>, vector<4x8x8xf32>
    %c0_5 = arith.constant 0 : index
    %c0_6 = arith.constant 0 : index
    %c0_7 = arith.constant 0 : index
    %2 = vector.load %arg4[%c0_5, %c0_6, %c0_7] : memref<4x8x8xf32, #tpu.memory_space<vmem>>, vector<4x8x8xf32>
    %c0_8 = arith.constant 0 : index
    %3 = memref.load %arg1[%c0_8] : memref<1xf32, #tpu.memory_space<smem>>
    "tpu.trace_start"() <{level = 10 : i32, message = "bqd,bdk->bqk"}> : () -> ()
    %cst = arith.constant dense<0.000000e+00> : vector<4x8x8xf32>
    %4 = tpu.matmul %0, %1, %cst {dimension_numbers = #tpu.dot_dimension_numbers<[2], [1], [1], [2], [0, 0, 0, 1, 1, 2], [0], [0]>} : vector<4x8x8xf32>, vector<4x8x8xf32>, vector<4x8x8xf32> -> vector<4x8x8xf32>
    "tpu.trace_stop"() : () -> ()
    %5 = vector.broadcast %3 : f32 to vector<4x8x8xf32>
    %6 = arith.mulf %4, %5 : vector<4x8x8xf32>
    %c0_9 = arith.constant 0 : index
    %c0_10 = arith.constant 0 : index
    %c0_11 = arith.constant 0 : index
    %7 = vector.load %arg5[%c0_9, %c0_10, %c0_11] : memref<4x8x8xf32, #tpu.memory_space<vmem>>, vector<4x8x8xf32>
    %8 = arith.addf %6, %7 : vector<4x8x8xf32>
    %c0_12 = arith.constant 0 : index
    %c0_13 = arith.constant 0 : index
    %c0_14 = arith.constant 0 : index
    %9 = vector.load %arg8[%c0_12, %c0_13, %c0_14] : memref<4x8x8xf32, #tpu.memory_space<vmem>>, vector<4x8x8xf32>
    tpu.vector_store %arg8[%c0_12, %c0_13, %c0_14], %8 {strides = array<i32>} : memref<4x8x8xf32, #tpu.memory_space<vmem>>, vector<4x8x8xf32>,
    %cst_15 = arith.constant dense<0xFF800000> : vector<4x8xf32>
    %10 = vector.multi_reduction <maximumf>, %8, %cst_15 [2] : vector<4x8x8xf32> to vector<4x8xf32>
    %11 = vector.shape_cast %10 : vector<4x8xf32> to vector<4x8x1xf32>
    %12 = vector.broadcast %11 : vector<4x8x1xf32> to vector<4x8x8xf32>
    %13 = arith.subf %8, %12 : vector<4x8x8xf32>
    %14 = math.exp %13 : vector<4x8x8xf32>
    %cst_16 = arith.constant dense<0.000000e+00> : vector<4x8xf32>
    %15 = vector.multi_reduction <add>, %14, %cst_16 [2] : vector<4x8x8xf32> to vector<4x8xf32>
    %16 = vector.shape_cast %15 : vector<4x8xf32> to vector<4x8x1xf32>
    %17 = tpu.reciprocal %16 : vector<4x8x1xf32> -> vector<4x8x1xf32>
    %18 = vector.broadcast %17 : vector<4x8x1xf32> to vector<4x8x8xf32>
    %19 = arith.mulf %14, %18 : vector<4x8x8xf32>
    %c0_17 = arith.constant 0 : index
    %c0_18 = arith.constant 0 : index
    %c0_19 = arith.constant 0 : index
    %20 = vector.load %arg7[%c0_17, %c0_18, %c0_19] : memref<4x8x8xf32, #tpu.memory_space<vmem>>, vector<4x8x8xf32>
    tpu.vector_store %arg7[%c0_17, %c0_18, %c0_19], %19 {strides = array<i32>} : memref<4x8x8xf32, #tpu.memory_space<vmem>>, vector<4x8x8xf32>,
    "tpu.trace_start"() <{level = 10 : i32, message = "bqk,bkd->bqd"}> : () -> ()
    %cst_20 = arith.constant dense<0.000000e+00> : vector<4x8x8xf32>
    %21 = tpu.matmul %19, %2, %cst_20 {dimension_numbers = #tpu.dot_dimension_numbers<[2], [1], [1], [2], [0, 0, 0, 1, 1, 2], [0], [0]>} : vector<4x8x8xf32>, vector<4x8x8xf32>, vector<4x8x8xf32> -> vector<4x8x8xf32>
    "tpu.trace_stop"() : () -> ()
    %c0_21 = arith.constant 0 : index
    %c0_22 = arith.constant 0 : index
    %c0_23 = arith.constant 0 : index
    %22 = vector.load %arg6[%c0_21, %c0_22, %c0_23] : memref<4x8x8xf32, #tpu.memory_space<vmem>>, vector<4x8x8xf32>
    tpu.vector_store %arg6[%c0_21, %c0_22, %c0_23], %21 {strides = array<i32>} : memref<4x8x8xf32, #tpu.memory_space<vmem>>, vector<4x8x8xf32>,
    return
  }
  func.func @transform_0(%arg0: i32) -> i32 {
    %c0_i32 = arith.constant 0 : i32
    %c0_i32_0 = arith.constant 0 : i32
    return %c0_i32 : i32
  }
  func.func @transform_1(%arg0: i32) -> (i32, i32, i32) {
    %c0_i32 = arith.constant 0 : i32
    %c0_i32_0 = arith.constant 0 : i32
    %c0_i32_1 = arith.constant 0 : i32
    return %arg0, %c0_i32, %c0_i32_0 : i32, i32, i32
  }
  func.func @transform_2(%arg0: i32) -> (i32, i32, i32) {
    %c0_i32 = arith.constant 0 : i32
    %c0_i32_0 = arith.constant 0 : i32
    %c0_i32_1 = arith.constant 0 : i32
    return %arg0, %c0_i32, %c0_i32_0 : i32, i32, i32
  }
  func.func @transform_3(%arg0: i32) -> (i32, i32, i32) {
    %c0_i32 = arith.constant 0 : i32
    %c0_i32_0 = arith.constant 0 : i32
    %c0_i32_1 = arith.constant 0 : i32
    return %arg0, %c0_i32, %c0_i32_0 : i32, i32, i32
  }
  func.func @transform_4(%arg0: i32) -> (i32, i32, i32) {
    %c0_i32 = arith.constant 0 : i32
    %c0_i32_0 = arith.constant 0 : i32
    %c0_i32_1 = arith.constant 0 : i32
    return %arg0, %c0_i32, %c0_i32_0 : i32, i32, i32
  }
  func.func @transform_5(%arg0: i32) -> (i32, i32, i32) {
    %c0_i32 = arith.constant 0 : i32
    %c0_i32_0 = arith.constant 0 : i32
    %c0_i32_1 = arith.constant 0 : i32
    return %arg0, %c0_i32, %c0_i32_0 : i32, i32, i32
  }
  func.func @transform_6(%arg0: i32) -> (i32, i32, i32) {
    %c0_i32 = arith.constant 0 : i32
    %c0_i32_0 = arith.constant 0 : i32
    %c0_i32_1 = arith.constant 0 : i32
    return %arg0, %c0_i32, %c0_i32_0 : i32, i32, i32
  }
  func.func @transform_7(%arg0: i32) -> (i32, i32, i32) {
    %c0_i32 = arith.constant 0 : i32
    %c0_i32_0 = arith.constant 0 : i32
    %c0_i32_1 = arith.constant 0 : i32
    return %arg0, %c0_i32, %c0_i32_0 : i32, i32, i32
  }
}

</mosaic_0001>

<bundles_post_ra>
// kernel: scaled_dot_product_attention.1
= control target key start
LH: loop header
LB: loop body
LE: loop exit
PB: predicated region body
PF: predicated region fallthrough
CT: control target
= control target key end

     0   :  { %s2336_s0 = inlined_call_operand.<no memory space> [shape: f32[1], index: 0, kind: input, shape index: {}]   ;;  %s2337_s1 = inlined_call_operand.hbm [shape: f32[8,8,8], index: 1, kind: input, shape index: {}]   ;;  %s2338_s2 = inlined_call_operand.hbm [shape: f32[8,8,8], index: 2, kind: input, shape index: {}]   ;;  %s2339_s3 = inlined_call_operand.hbm [shape: f32[8,8,8], index: 3, kind: input, shape index: {}]   ;;  %s2340_s4 = inlined_call_operand.hbm [shape: f32[8,8,8], index: 4, kind: input, shape index: {}]   ;;  %s2341_s5 = inlined_call_operand.hbm [shape: f32[8,8,8], index: 5, kind: output, shape index: {0}]   ;;  %s2342_s6 = inlined_call_operand.hbm [shape: f32[8,8,8], index: 6, kind: output, shape index: {1}]   ;;  %s2343_s7 = inlined_call_operand.hbm [shape: f32[8,8,8], index: 7, kind: output, shape index: {2}]  }
   0x1   :  { %2354 = sst [smem:[#allocation23_spill]] %s2337_s1 }
   0x2   :  { %2355 = sst [smem:[#allocation24_spill]] %s2338_s2 }
   0x3   :  { %13 = sst [smem:[#allocation2]] %s2336_s0 }
   0x4   :  { %14 = vsyncpa [#allocation4], 0 }
   0x5   :  { %16 = vsyncpa [#allocation4 + $0x1], 0 }
   0x6   :  { %17 = vsyncpa [#allocation7], 0 }
   0x7   :  { %19 = vsyncpa [#allocation7 + $0x1], 0 }
   0x8   :  { %20 = vsyncpa [#allocation10], 0 }
   0x9   :  { %22 = vsyncpa [#allocation10 + $0x1], 0 }
   0xa   :  { %23 = vsyncpa [#allocation5], 0 }
   0xb   :  { %25 = vsyncpa [#allocation5 + $0x1], 0 }
   0xc   :  { %26 = vsyncpa [#allocation13], 0 }
   0xd   :  { %28 = vsyncpa [#allocation13 + $0x1], 0  ;;  %s1873_s26 = smov 0   ;;  %s1875_s27 = smov 0  }
   0xe   :  { %s1877_s28 = smov 0   ;;  %s1879_s29 = smov 0  }
   0xf LB: > { %2356 = sst [smem:[#allocation20_spill]] %s1811_s28  ;;  %s1894_s0 = sadd.s32 4294967295, %s1815_s29   ;;  %s1815_s29 = sphi %s1879_s29, %s2376_s29   ;;  %s1811_s28 = sphi %s1877_s28, %s2378_s28   ;;  %s1807_s27 = sphi %s1875_s27, %s2380_s27   ;;  %s1803_s26 = sphi %s1873_s26, %s2379_s26  }
  0x10   : > { %s2344_s30 = sadd.s32 4294967294, %s1815_s29   ;;  %s1898_s8 = sadd.s32 1, %s1815_s29  }
  0x11   : > { %2357 = sst [smem:[#allocation21_spill]] %s1898_s8  ;;  %s62_s9 = sadd.s32 1, %s1811_s28 }
  0x12   : > { %s59_s10 = ssub.s32 %s1815_s29, %s1898_s8  ;;  %p69_p0 = scmp.ne.s32.totalorder %s1811_s28, %s1807_s27 }
  0x13   : > { %p60_p1 = scmp.eq.s32.totalorder %s59_s10, 0  ;;  %p70_p2 = scmp.eq.s32.totalorder %s1815_s29, 0 }
  0x14   : > { %p75_p3 = scmp.ne.s32.totalorder %s1807_s27, %s1803_s26  ;;  %p76_p4 = scmp.eq.s32.totalorder %s1894_s0, 0 }
  0x15   : > { %s1910_s11 = scalar_select %p60_p1, %s1811_s28, %s62_s9  }
  0x16   : > { %p71_p5 = por %p70_p2, %p69_p0  ;;  %p1912_p6 = por %p76_p4, %p75_p3 }
  0x17   : > { %2358 = sst [smem:[#allocation22_spill]] %s1910_s11  ;;  %p177_p7 = scmp.eq.s32.totalorder %s1894_s0, 1 }
  0x18   : > { %s2359_s12 = scalar_select %p1912_p6, 1, 0 }
  0x19   : > { %p183_p8 = scmp.eq.s32.totalorder %s2344_s30, 1  ;;  %p1505_p10 = scmp.lt.s32.totalorder %s1815_s29, 2 }
  0x1a   : > { %p1921_p11 = por %p177_p7, %p69_p0  ;;  %s1930_s15 = sand.u32 1, %s1811_s28  }
  0x1b   : > { %p1925_p12 = por %p183_p8, %p75_p3  ;;  %s1933_s16 = sshll.u32 %s1815_s29, 9 }
  0x1c   : > { %s2360_s13 = scalar_select %p1921_p11, 1, 0 }
  0x1d   : > { %s2361_s14 = scalar_select %p1925_p12, 1, 0 }
  0x1e   : > { %s1936_s17 = sshll.u32 %s1930_s15, 5  ;;  %p1938_p13 = pnand %p1505_p10, %p71_p5 }
  0x1f   : > { %s279_s19 = sand.u32 1, %s1815_s29   ;;  %s2363_s2 = sld [smem:[#allocation24_spill]] }
  0x20   : > { %s283_s23 = scalar_lea.vmem [#allocation6], %s1936_s17  ;;  %s1953_s25 = scalar_lea.sflag [#allocation7], %s279_s19 }
  0x21   : > { %s290_s24 = sshll.u32 %s283_s23, 4  ;;  %p1959_p2 = pneg %p1938_p13  ;;  %s1950_s24 = int_to_ptr.vmem [resolvable:$true] %s290_s24 }
  0x25   : > { %s1947_s22 = scalar_lea.hbm %s2363_s2, %s1933_s16  ;;  %s1566_s23 = scalar_lea.hbm %s2363_s2, 1024 }
  0x26   : > { %s1561_s9 = scalar_lea.hbm %s1947_s22, 512  ;;  %p1567_p5 = scmp.lt.u32.totalorder %s1947_s22, %s2363_s2 }
  0x27   : > { %p1562_p1 = scmp.ne.s32.totalorder %s1947_s22, %s1561_s9  ;;  %p1568_p7 = scmp.lt.u32.totalorder %s1566_s23, %s1561_s9 }
  0x28   : > { %p1570_p10 = scmp.lt.u32.totalorder %s1561_s9, %s1947_s22 }
  0x29   : > { %p1564_p3 = pnand %p1959_p2, %p1562_p1  ;;  %p1569_p8 = por %p1568_p7, %p1567_p5 }
  0x2b   : > { %p1565_p4 = pneg %p1564_p3  ;;  %p1571_p9 = por %p1570_p10, %p1569_p8 }
  0x2d   : > { %p1572_p0 = pnand %p1571_p9, %p1565_p4 }
  0x2f   : > { %1575 = shalt.err (!%p1572_p0)
}
  0x30   : > { %s1576_s19 = scalar_lea.vmem %s1950_s24, 512  ;;  %s1817_s20 = smov [#allocation6]  }
  0x31   : > { %p1577_p1 = scmp.ne.s32.totalorder %s1950_s24, %s1576_s19  ;;  %s1581_s21 = sshll.u32 %s1817_s20, 4  ;;  %s1582_s21 = int_to_ptr.vmem [resolvable:$false] %s1581_s21 }
  0x32   : > { %s1583_s30 = scalar_lea.vmem %s1582_s21, 1024  ;;  %p1584_p11 = scmp.lt.s32.totalorder %s1950_s24, %s1582_s21 }
  0x33   : > { %p1579_p3 = pnand %p1577_p1, %p1959_p2  ;;  %p1585_p6 = scmp.lt.s32.totalorder %s1583_s30, %s1576_s19 }
  0x35   : > { %p1580_p12 = pneg %p1579_p3  ;;  %p1586_p5 = por %p1585_p6, %p1584_p11 }
  0x37   : > { %p1587_p7 = pnand %p1586_p5, %p1580_p12 }
  0x39   : > { %1590 = shalt.err (!%p1587_p7)
}
  0x3a   : > { %s2347_s11 = smov 128   ;;  %s2349_s9 = smov 8  }
  0x3b   : > { %1488 = dma.hbm_to_vmem [thread:$0]  (!%p1938_p13), %s1947_s22, 512, %s1950_s24, %s1953_s25, %s2347_s11, %s2347_s11, %s2349_s9  }
  0x3c   : > { %p340_p6 = scmp.lt.s32.totalorder %s1815_s29, 3  ;;  %s2365_s1 = sld [smem:[#allocation23_spill]] }
  0x3d   : > { %p2366_p9 = scmp.ge.s32.totalorder %s1815_s29, 1  ;;  %s262_s30 = scalar_lea.vmem [#allocation3], %s1936_s17 }
  0x3e   : > { %s269_s2 = sshll.u32 %s262_s30, 4  ;;  %s259_s22 = scalar_lea.sflag [#allocation4], %s1930_s15  ;;  %s2000_s2 = int_to_ptr.vmem [resolvable:$true] %s269_s2 }
  0x3f   : > { %p1995_p11 = pnand %p2366_p9, %p340_p6 }
  0x41   : > { %s2367_s21 = scalar_select %p1995_p11, 1, 0 }
  0x42   : > { %s1991_s20 = scalar_lea.hbm %s2365_s1, %s1933_s16  ;;  %s1596_s11 = scalar_lea.hbm %s2365_s1, 1024 }
  0x43   : > { %s1591_s24 = scalar_lea.hbm %s1991_s20, 512  ;;  %p1597_p8 = scmp.lt.u32.totalorder %s1991_s20, %s2365_s1 }
  0x44   : > { %p1592_p12 = scmp.ne.s32.totalorder %s1991_s20, %s1591_s24  ;;  %p1598_p10 = scmp.lt.u32.totalorder %s1596_s11, %s1591_s24 }
  0x45   : > { %p1600_p3 = scmp.lt.u32.totalorder %s1591_s24, %s1991_s20 }
  0x46   : > { %p1594_p0 = pnand %p1592_p12, %p1959_p2  ;;  %p1599_p1 = por %p1598_p10, %p1597_p8 }
  0x48   : > { %p1595_p4 = pneg %p1594_p0  ;;  %p1601_p5 = por %p1600_p3, %p1599_p1 }
  0x4a   : > { %p1602_p7 = pnand %p1601_p5, %p1595_p4 }
  0x4c   : > { %1605 = shalt.err (!%p1602_p7)
}
  0x4d   : > { %s1606_s30 = scalar_lea.vmem %s2000_s2, 512  ;;  %s1820_s23 = smov [#allocation3]  }
  0x4e   : > { %p1607_p6 = scmp.ne.s32.totalorder %s2000_s2, %s1606_s30  ;;  %s1611_s19 = sshll.u32 %s1820_s23, 4  ;;  %s1612_s19 = int_to_ptr.vmem [resolvable:$false] %s1611_s19 }
  0x4f   : > { %s1613_s28 = scalar_lea.vmem %s1612_s19, 1024  ;;  %p1614_p0 = scmp.lt.s32.totalorder %s2000_s2, %s1612_s19 }
  0x50   : > { %p1609_p9 = pnand %p1607_p6, %p1959_p2  ;;  %p1615_p11 = scmp.lt.s32.totalorder %s1613_s28, %s1606_s30 }
  0x52   : > { %p1610_p12 = pneg %p1609_p9  ;;  %p1616_p8 = por %p1615_p11, %p1614_p0 }
  0x54   : > { %p1617_p10 = pnand %p1616_p8, %p1610_p12 }
  0x56   : > { %1620 = shalt.err (!%p1617_p10)
}
  0x57   : > { %s2368_s11 = smov 8   ;;  %s2369_s9 = smov 128  }
  0x58   : > { %1485 = dma.hbm_to_vmem [thread:$0]  (!%p1938_p13), %s1991_s20, 512, %s2000_s2, %s259_s22, %s2369_s9, %s2369_s9, %s2368_s11  }
  0x59   : > { %s2033_s30 = scalar_lea.hbm %s2339_s3, %s1933_s16  ;;  %s304_s19 = scalar_lea.vmem [#allocation8], %s1936_s17 }
  0x5a   : > { %s311_s28 = sshll.u32 %s304_s19, 4  ;;  %s1621_s1 = scalar_lea.hbm %s2033_s30, 512  ;;  %s2036_s28 = int_to_ptr.vmem [resolvable:$true] %s311_s28 }
  0x5b   : > { %p1622_p11 = scmp.ne.s32.totalorder %s2033_s30, %s1621_s1  ;;  %s1626_s20 = scalar_lea.hbm %s2339_s3, 1024 }
  0x5c   : > { %p1627_p3 = scmp.lt.u32.totalorder %s2033_s30, %s2339_s3  ;;  %p1628_p5 = scmp.lt.u32.totalorder %s1626_s20, %s1621_s1 }
  0x5d   : > { %p1624_p4 = pnand %p1622_p11, %p1959_p2  ;;  %p1630_p6 = scmp.lt.u32.totalorder %s1621_s1, %s2033_s30 }
  0x5e   : > { %p1629_p7 = por %p1628_p5, %p1627_p3 }
  0x5f   : > { %p1625_p1 = pneg %p1624_p4 }
  0x60   : > { %p1631_p9 = por %p1630_p6, %p1629_p7 }
  0x62   : > { %p1632_p12 = pnand %p1631_p9, %p1625_p1 }
  0x64   : > { %1635 = shalt.err (!%p1632_p12)
}
  0x65   : > { %s1636_s23 = scalar_lea.vmem %s2036_s28, 512  ;;  %s1821_s8 = smov [#allocation8]  }
  0x66   : > { %p1637_p0 = scmp.ne.s32.totalorder %s2036_s28, %s1636_s23  ;;  %s1641_s19 = sshll.u32 %s1821_s8, 4  ;;  %s1642_s19 = int_to_ptr.vmem [resolvable:$false] %s1641_s19 }
  0x67   : > { %s1643_s2 = scalar_lea.vmem %s1642_s19, 1024  ;;  %p1644_p11 = scmp.lt.s32.totalorder %s2036_s28, %s1642_s19 }
  0x68   : > { %p1639_p8 = pnand %p1637_p0, %p1959_p2  ;;  %p1645_p4 = scmp.lt.s32.totalorder %s1643_s2, %s1636_s23 }
  0x6a   : > { %p1640_p10 = pneg %p1639_p8  ;;  %p1646_p3 = por %p1645_p4, %p1644_p11 }
  0x6c   : > { %p1647_p5 = pnand %p1646_p3, %p1640_p10 }
  0x6e   : > { %1650 = shalt.err (!%p1647_p5)
}
  0x6f   : > { %1491 = dma.hbm_to_vmem [thread:$0]  (!%p1938_p13), %s2033_s30, 512, %s2036_s28, %s1953_s25, %s2369_s9, %s2369_s9, %s2368_s11  }
  0x70   : > { %s2067_s22 = scalar_lea.hbm %s2340_s4, %s1933_s16  ;;  %s325_s24 = scalar_lea.vmem [#allocation9], %s1936_s17 }
  0x71   : > { %s332_s23 = sshll.u32 %s325_s24, 4  ;;  %s322_s8 = scalar_lea.sflag [#allocation10], %s1930_s15  ;;  %s2070_s23 = int_to_ptr.vmem [resolvable:$true] %s332_s23 }
  0x72   : > { %s1651_s19 = scalar_lea.hbm %s2067_s22, 512  ;;  %s1656_s28 = scalar_lea.hbm %s2340_s4, 1024 }
  0x73   : > { %p1652_p1 = scmp.ne.s32.totalorder %s2067_s22, %s1651_s19  ;;  %p1657_p9 = scmp.lt.u32.totalorder %s2067_s22, %s2340_s4 }
  0x74   : > { %p1658_p12 = scmp.lt.u32.totalorder %s1656_s28, %s1651_s19  ;;  %p1660_p8 = scmp.lt.u32.totalorder %s1651_s19, %s2067_s22 }
  0x75   : > { %p1654_p7 = pnand %p1652_p1, %p1959_p2 }
  0x76   : > { %p1659_p0 = por %p1658_p12, %p1657_p9 }
  0x77   : > { %p1655_p6 = pneg %p1654_p7 }
  0x78   : > { %p1661_p10 = por %p1660_p8, %p1659_p0 }
  0x7a   : > { %p1662_p11 = pnand %p1661_p10, %p1655_p6 }
  0x7c   : > { %1665 = shalt.err (!%p1662_p11)
}
  0x7d   : > { %s1666_s17 = scalar_lea.vmem %s2070_s23, 512  ;;  %s1822_s1 = smov [#allocation9]  }
  0x7e   : > { %p1667_p4 = scmp.ne.s32.totalorder %s2070_s23, %s1666_s17  ;;  %s1671_s20 = sshll.u32 %s1822_s1, 4  ;;  %s1672_s20 = int_to_ptr.vmem [resolvable:$false] %s1671_s20 }
  0x7f   : > { %s1673_s24 = scalar_lea.vmem %s1672_s20, 1024  ;;  %p1674_p1 = scmp.lt.s32.totalorder %s2070_s23, %s1672_s20 }
  0x80   : > { %p1669_p3 = pnand %p1667_p4, %p1959_p2  ;;  %p1675_p7 = scmp.lt.s32.totalorder %s1673_s24, %s1666_s17 }
  0x82   : > { %p1670_p5 = pneg %p1669_p3  ;;  %p1676_p9 = por %p1675_p7, %p1674_p1 }
  0x84   : > { %p1677_p12 = pnand %p1676_p9, %p1670_p5 }
  0x86   : > { %1680 = shalt.err (!%p1677_p12)
}
  0x87   : > { %1494 = dma.hbm_to_vmem [thread:$0]  (!%p1938_p13), %s2067_s22, 512, %s2070_s23, %s322_s8, %s2369_s9, %s2369_s9, %s2368_s11  }
  0x88   : > { %p2370_p2 = scmp.ne.s32.totalorder %s2367_s21, 0 }
  0x89   : > { %s2102_s10 = sand.u32 (!%p2370_p2), 1, %s1807_s27   ;;  %p2371_p6 = scmp.ne.s32.totalorder (!%p2370_p2), %s2359_s12, 0 }
  0x8a   : > { %344 = sbr.rel (%p2370_p2) target bundleno = 920 (0x398), region = 40  ;;  %s2105_s19 = sshll.u32 (!%p2370_p2), %s2102_s10, 5 }
  0x8b   : > { %s347_s18 = scalar_lea.sflag (!%p2370_p2), [#allocation4], %s2102_s10  ;;  %s2109_s25 = scalar_lea.vmem (!%p2370_p2), [#allocation3], %s2105_s19 }
  0x91   : > { %1782 = dma.done.wait (%p2371_p6), %s347_s18, 512  }
  0x92   : > { %1784 = vsyncadd (%p2371_p6), %s347_s18, 4294966784  ;;  %s355_s15 = sand.u32 1, %s1894_s0   ;;  %s359_s11 = scalar_lea.vmem [#allocation6], %s2105_s19 }
  0x93   : > { %s356_s21 = scalar_lea.sflag [#allocation7], %s355_s15 }
  0x94   : > { %1786 = dma.done.wait (%p2371_p6), %s356_s21, 1024  }
  0x95   : > { %1788 = vsyncadd (%p2371_p6), %s356_s21, 4294966272  ;;  %s2124_s9 = scalar_lea.vmem [#allocation8], %s2105_s19  ;;  %s374_s22 = scalar_lea.sflag [#allocation10], %s2102_s10 }
  0x96   : > { %s2128_s23 = scalar_lea.vmem [#allocation9], %s2105_s19 }
  0x97   : > { %1790 = dma.done.wait (%p2371_p6), %s374_s22, 512  }
  0x98   : > { %1792 = vsyncadd (%p2371_p6), %s374_s22, 4294966784  ;;  %v1823_v0 = vmov 0.0   ;;  %vm1824_vm0 = vmmov 0   ;;  %vm453_vm1 = vcmask 64512   ;;  %v444_v1 = vld [vmem:[%s359_s11] sm:$0xff]  ;;  %v446_v3 = vld [vmem:[%s359_s11 + $0x10] sm:$0xff] }
  0x99   : > { %1428 = vmatprep.subr.mxu0 %v1823_v0  ;;  %1430 = vmatprep.mubr.msk.f32.mxu0 %vm1824_vm0, %v1823_v0  ;;  %v440_v2 = vld [vmem:[%s2109_s25] sm:$0xff]  ;;  %v445_v4 = vld [vmem:[%s359_s11 + $0x8] sm:$0xff]  ;;  %v442_v6 = vld [vmem:[%s2109_s25 + $0x10] sm:$0xff]  ;;  %s452_s12 = sld [smem:[#allocation2]]  ;;  %s2164_s8 = scalar_lea.vmem [#allocation14], %s2105_s19 }
  0x9a   : > { %1433 = vmatprep.subr.mxu1 %v1823_v0  ;;  %1435 = vmatprep.mubr.msk.f32.mxu1 %vm1824_vm0, %v1823_v0  ;;  %v441_v5 = vld [vmem:[%s2109_s25 + $0x8] sm:$0xff]  ;;  %v447_v7 = vld [vmem:[%s359_s11 + $0x18] sm:$0xff]  ;;  %v751_v11 = vld [vmem:[%s2128_s23] sm:$0xff]  ;;  %s425_s30 = scalar_lea.vmem [#allocation12], %s2105_s19  ;;  %s1163_s28 = sshll.u32 %s2164_s8, 4  ;;  %s2203_s28 = int_to_ptr.vmem [resolvable:$true] %s1163_s28 }
  0x9b   : > { %1429 = vmatpush3.msra.mxu0 %v444_v1  ;;  %1434 = vmatpush3.msra.mxu1 %v445_v4  ;;  %v443_v8 = vld [vmem:[%s2109_s25 + $0x18] sm:$0xff]  ;;  %v752_v15 = vld [vmem:[%s2128_s23 + $0x8] sm:$0xff]  ;;  %v753_v20 = vld [vmem:[%s2128_s23 + $0x10] sm:$0xff]  ;;  %s2206_s16 = sshll.u32 %s1894_s0, 9  ;;  %s1147_s2 = sshll.u32 %s425_s30, 4  ;;  %s2214_s2 = int_to_ptr.vmem [resolvable:$true] %s1147_s2 }
  0x9c   : > { %1431 = vmatmul.mubr.msk.f32.vlgmr.msra.gmra.mrb[0].mxu0 %vm453_vm1, %v440_v2  ;;  %1438 = vmatprep.subr.mxu0 %v1823_v0  ;;  %v754_v26 = vld [vmem:[%s2128_s23 + $0x18] sm:$0xff]  ;;  %v448_v54 = vld [vmem:[%s2124_s9] sm:$0xff]  ;;  %v449_v55 = vld [vmem:[%s2124_s9 + $0x8] sm:$0xff]  ;;  %s2212_s20 = scalar_lea.hbm %s2342_s6, %s2206_s16  ;;  %s2220_s25 = scalar_lea.hbm %s2343_s7, %s2206_s16 }
  0x9d   : > { %1439 = vmatpush3.msra.mxu0 %v446_v3  ;;  %1440 = vmatprep.mubr.msk.f32.mxu0 %vm1824_vm0, %v1823_v0  ;;  %v450_v62 = vld [vmem:[%s2124_s9 + $0x10] sm:$0xff]  ;;  %v451_v3 = vld [vmem:[%s2124_s9 + $0x18] sm:$0xff]  ;;  %s2224_s21 = scalar_lea.sflag [#allocation13], %s355_s15  ;;  %s1681_s11 = scalar_lea.vmem %s2214_s2, 512 }
  0x9e   : > { %1436 = vmatmul.mubr.msk.f32.vlgmr.msra.gmra.mrb[0].mxu1 %vm453_vm1, %v441_v5  ;;  %1443 = vmatprep.subr.mxu1 %v1823_v0  ;;  %p1682_p13 = scmp.ne.s32.totalorder %s2214_s2, %s1681_s11  ;;  %p2372_p0 = scmp.ne.s32.totalorder %s2360_s13, 0 }
  0x9f   : > { %1445 = vmatprep.mubr.msk.f32.mxu1 %vm1824_vm0, %v1823_v0  ;;  %1444 = vmatpush3.msra.mxu1 %v447_v7  ;;  %v746_v9 = vstv %s452_s12  ;;  %s1825_s9 = smov [#allocation12]  }
  0xa0   : > { %1441 = vmatmul.mubr.msk.f32.vlgmr.msra.gmra.mrb[2].mxu0 %vm453_vm1, %v442_v6  ;;  %1448 = vmatprep.subr.mxu0 %v1823_v0  ;;  %p1683_p8 = pnand %p1682_p13, %p2372_p0  ;;  %s1685_s22 = sshll.u32 %s1825_s9, 4  ;;  %s1686_s22 = int_to_ptr.vmem [resolvable:$false] %s1685_s22 }
  0xa1   : > { %1450 = vmatprep.mubr.msk.f32.mxu0 %vm1824_vm0, %v1823_v0  ;;  %1453 = vmatprep.subr.mxu1 %v1823_v0  ;;  %s1687_s23 = scalar_lea.vmem %s1686_s22, 1024  ;;  %p1688_p11 = scmp.lt.s32.totalorder %s2214_s2, %s1686_s22 }
  0xa2   : > { %1446 = vmatmul.mubr.msk.f32.vlgmr.msra.gmra.mrb[2].mxu1 %vm453_vm1, %v443_v8  ;;  %1449 = vmatpush3.msra.mxu0 %v448_v54  ;;  %p1684_p10 = pneg %p1683_p8  ;;  %p1689_p4 = scmp.lt.s32.totalorder %s1687_s23, %s1681_s11 }
  0xa3   : > { %1455 = vmatprep.mubr.msk.f32.mxu1 %vm1824_vm0, %v1823_v0  ;;  %1458 = vmatprep.subr.mxu0 %v1823_v0 }
  0xa4   : > { %1454 = vmatpush3.msra.mxu1 %v449_v55  ;;  %p1690_p3 = por %p1689_p4, %p1688_p11 }
  0xa5   : > { %1463 = vmatprep.subr.mxu1 %v1823_v0 }
  0xa6   : > { %p1691_p5 = pnand %p1690_p3, %p1684_p10 }
 0x16f   : > { %v523_v10 = vpop.f32.mrb[0].mxu0 }
 0x170   : > { %v747_v12 = vmul.f32 %v746_v9, %v523_v10  ;;  %v1432_v13 = vpop.f32.mrb[1].mxu0 }
 0x171   : > { %v596_v14 = vpop.f32.mrb[0].mxu1 }
 0x172   : > { %v755_v16 = vadd.f32 %v751_v11, %v747_v12  ;;  %v748_v17 = vmul.f32 %v746_v9, %v596_v14  ;;  %v1437_v18 = vpop.f32.mrb[1].mxu1 }
 0x173   : > { %v669_v19 = vpop.f32.mrb[2].mxu0 }
 0x174   : > { %759 = vst.msk [vmem:[%s2164_s8] sm:$0xff] %vm453_vm1, %v755_v16  ;;  %v756_v21 = vadd.f32 %v752_v15, %v748_v17  ;;  %v749_v22 = vmul.f32 %v746_v9, %v669_v19  ;;  %v1442_v23 = vpop.f32.mrb[3].mxu0  ;;  %v763_v24 = vsel %vm453_vm1, %v755_v16, -inf }
 0x175   : > { %764 = vmax.xlane.f32.xlu0 %v763_v24  ;;  %v742_v25 = vpop.f32.mrb[2].mxu1 }
 0x176   : > { %760 = vst.msk [vmem:[%s2164_s8 + $0x8] sm:$0xff] %vm453_vm1, %v756_v21  ;;  %v757_v27 = vadd.f32 %v753_v20, %v749_v22  ;;  %v750_v28 = vmul.f32 %v746_v9, %v742_v25  ;;  %v1447_v29 = vpop.f32.mrb[3].mxu1  ;;  %v766_v30 = vsel %vm453_vm1, %v756_v21, -inf }
 0x178   : > { %761 = vst.msk [vmem:[%s2164_s8 + $0x10] sm:$0xff] %vm453_vm1, %v757_v27  ;;  %v758_v31 = vadd.f32 %v754_v26, %v750_v28  ;;  %v769_v32 = vsel %vm453_vm1, %v757_v27, -inf }
 0x179   : > { %767 = vmax.xlane.f32.xlu0 %v766_v30  ;;  %770 = vmax.xlane.f32.xlu1 %v769_v32 }
 0x17a   : > { %762 = vst.msk [vmem:[%s2164_s8 + $0x18] sm:$0xff] %vm453_vm1, %v758_v31  ;;  %v772_v33 = vsel %vm453_vm1, %v758_v31, -inf }
 0x17d   : > { %773 = vmax.xlane.f32.xlu1 %v772_v33 }
 0x202   : > { %v765_v34 = vpop.xlane.xlu0 %764 }
 0x203   : > { %v775_v35 = vsub.f32 %v755_v16, %v765_v34 }
 0x205   : > { %v779_v36 = vmul.f32 1.442695, %v775_v35 }
 0x206   : > { %v768_v37 = vpop.xlane.xlu0 %767  ;;  %v771_v38 = vpop.xlane.xlu1 %770 }
 0x207   : > { %1545 = vpow2.f32 %v779_v36  ;;  %v776_v39 = vsub.f32 %v756_v21, %v768_v37  ;;  %v777_v40 = vsub.f32 %v757_v27, %v771_v38 }
 0x209   : > { %v781_v41 = vmul.f32 1.442695, %v776_v39  ;;  %v783_v42 = vmul.f32 1.442695, %v777_v40 }
 0x20a   : > { %v774_v43 = vpop.xlane.xlu1 %773 }
 0x20b   : > { %1547 = vpow2.f32 %v781_v41  ;;  %v778_v44 = vsub.f32 %v758_v31, %v774_v43 }
 0x20c   : > { %1549 = vpow2.f32 %v783_v42 }
 0x20d   : > { %v785_v45 = vmul.f32 1.442695, %v778_v44 }
 0x20f   : > { %1551 = vpow2.f32 %v785_v45 }
 0x211   : > { %v1546_v46 = vpop.eup %1545 }
 0x212   : > { %v787_v47 = vsel %vm453_vm1, %v1546_v46, 0.0 }
 0x213   : > { %788 = vadd.xlane.f32.xlu0 %v787_v47 }
 0x215   : > { %v1548_v48 = vpop.eup %1547 }
 0x216   : > { %v1550_v49 = vpop.eup %1549  ;;  %v790_v50 = vsel %vm453_vm1, %v1548_v48, 0.0 }
 0x217   : > { %791 = vadd.xlane.f32.xlu1 %v790_v50  ;;  %v793_v51 = vsel %vm453_vm1, %v1550_v49, 0.0 }
 0x218   : > { %794 = vadd.xlane.f32.xlu0 %v793_v51 }
 0x219   : > { %v1552_v52 = vpop.eup %1551 }
 0x21a   : > { %v796_v53 = vsel %vm453_vm1, %v1552_v52, 0.0 }
 0x21b   : > { %797 = vadd.xlane.f32.xlu1 %v796_v53 }
 0x2a0   : > { %v789_v56 = vpop.xlane.xlu0 %788 }
 0x2a1   : > { %1553 = vrcp.f32 %v789_v56 }
 0x2a4   : > { %v792_v57 = vpop.xlane.xlu1 %791 }
 0x2a5   : > { %v795_v58 = vpop.xlane.xlu0 %794  ;;  %1555 = vrcp.f32 %v792_v57 }
 0x2a6   : > { %1557 = vrcp.f32 %v795_v58 }
 0x2a8   : > { %v798_v59 = vpop.xlane.xlu1 %797 }
 0x2a9   : > { %1559 = vrcp.f32 %v798_v59 }
 0x2ab   : > { %v1554_v60 = vpop.eup %1553 }
 0x2ac   : > { %v803_v61 = vmul.f32 %v1554_v60, %v1546_v46 }
 0x2ae   : > { %807 = vst.msk [vmem:[%s425_s30] sm:$0xff] %vm453_vm1, %v803_v61  ;;  %1451 = vmatmul.mubr.msk.f32.vlgmr.msra.gmra.mrb[4].mxu0 %vm453_vm1, %v803_v61 }
 0x2af   : > { %v1556_v63 = vpop.eup %1555  ;;  %1459 = vmatpush3.msra.mxu0 %v450_v62  ;;  %1460 = vmatprep.mubr.msk.f32.mxu0 %vm1824_vm0, %v1823_v0 }
 0x2b0   : > { %v1558_v1 = vpop.eup %1557  ;;  %v804_v2 = vmul.f32 %v1556_v63, %v1548_v48 }
 0x2b1   : > { %v805_v4 = vmul.f32 %v1558_v1, %v1550_v49 }
 0x2b2   : > { %808 = vst.msk [vmem:[%s425_s30 + $0x8] sm:$0xff] %vm453_vm1, %v804_v2  ;;  %1456 = vmatmul.mubr.msk.f32.vlgmr.msra.gmra.mrb[4].mxu1 %vm453_vm1, %v804_v2 }
 0x2b3   : > { %v1560_v5 = vpop.eup %1559  ;;  %809 = vst.msk [vmem:[%s425_s30 + $0x10] sm:$0xff] %vm453_vm1, %v805_v4  ;;  %1461 = vmatmul.mubr.msk.f32.vlgmr.msra.gmra.mrb[6].mxu0 %vm453_vm1, %v805_v4  ;;  %1464 = vmatpush3.msra.mxu1 %v451_v3 }
 0x2b4   : > { %v806_v6 = vmul.f32 %v1560_v5, %v1552_v52  ;;  %1465 = vmatprep.mubr.msk.f32.mxu1 %vm1824_vm0, %v1823_v0 }
 0x2b6   : > { %810 = vst.msk [vmem:[%s425_s30 + $0x18] sm:$0xff] %vm453_vm1, %v806_v6  ;;  %1466 = vmatmul.mubr.msk.f32.vlgmr.msra.gmra.mrb[6].mxu1 %vm453_vm1, %v806_v6 }
 0x2b7   : > { %1694 = shalt.err (!%p1691_p5)
}
 0x2b8   : > { %s1695_s0 = scalar_lea.hbm %s2212_s20, 512  ;;  %s1699_s8 = scalar_lea.hbm %s2342_s6, 1024 }
 0x2b9   : > { %p1696_p1 = scmp.ne.s32.totalorder %s2212_s20, %s1695_s0  ;;  %p1700_p12 = scmp.lt.u32.totalorder %s2212_s20, %s2342_s6 }
 0x2ba   : > { %p1701_p2 = scmp.lt.u32.totalorder %s1699_s8, %s1695_s0  ;;  %p1703_p13 = scmp.lt.u32.totalorder %s1695_s0, %s2212_s20 }
 0x2bb   : > { %p1697_p7 = pnand %p1696_p1, %p2372_p0 }
 0x2bc   : > { %p1702_p6 = por %p1701_p2, %p1700_p12 }
 0x2bd   : > { %p1698_p9 = pneg %p1697_p7 }
 0x2be   : > { %p1704_p8 = por %p1703_p13, %p1702_p6 }
 0x2c0   : > { %p1705_p10 = pnand %p1704_p8, %p1698_p9 }
 0x2c2   : > { %1708 = shalt.err (!%p1705_p10)
}
 0x2c3   : > { %s1826_s1 = smov 128   ;;  %s1827_s24 = smov 8  }
 0x2c4   : > { %1477 = dma.vmem_to_hbm [thread:$0]  (%p2372_p0), %s2214_s2, 512, %s2212_s20, %s2224_s21, %s1826_s1, %s1826_s1, %s1827_s24  }
 0x2c5   : > { %s1709_s18 = scalar_lea.vmem %s2203_s28, 512  ;;  %s1828_s11 = smov [#allocation14]  }
 0x2c6   : > { %p1710_p11 = scmp.ne.s32.totalorder %s2203_s28, %s1709_s18  ;;  %s1713_s9 = sshll.u32 %s1828_s11, 4  ;;  %s1714_s9 = int_to_ptr.vmem [resolvable:$false] %s1713_s9 }
 0x2c7   : > { %s1715_s22 = scalar_lea.vmem %s1714_s9, 1024  ;;  %p1716_p5 = scmp.lt.s32.totalorder %s2203_s28, %s1714_s9 }
 0x2c8   : > { %p1711_p4 = pnand %p1710_p11, %p2372_p0  ;;  %p1717_p1 = scmp.lt.s32.totalorder %s1715_s22, %s1709_s18 }
 0x2ca   : > { %p1712_p3 = pneg %p1711_p4  ;;  %p1718_p7 = por %p1717_p1, %p1716_p5 }
 0x2cc   : > { %p1719_p9 = pnand %p1718_p7, %p1712_p3 }
 0x2ce   : > { %1722 = shalt.err (!%p1719_p9)
}
 0x2cf   : > { %s1723_s2 = scalar_lea.hbm %s2220_s25, 512  ;;  %s1727_s0 = scalar_lea.hbm %s2343_s7, 1024 }
 0x2d0   : > { %p1724_p12 = scmp.ne.s32.totalorder %s2220_s25, %s1723_s2  ;;  %p1728_p13 = scmp.lt.u32.totalorder %s2220_s25, %s2343_s7 }
 0x2d1   : > { %p1729_p8 = scmp.lt.u32.totalorder %s1727_s0, %s1723_s2  ;;  %p1731_p11 = scmp.lt.u32.totalorder %s1723_s2, %s2220_s25 }
 0x2d2   : > { %p1725_p2 = pnand %p1724_p12, %p2372_p0 }
 0x2d3   : > { %p1730_p10 = por %p1729_p8, %p1728_p13 }
 0x2d4   : > { %p1726_p6 = pneg %p1725_p2 }
 0x2d5   : > { %p1732_p4 = por %p1731_p11, %p1730_p10 }
 0x2d7   : > { %p1733_p3 = pnand %p1732_p4, %p1726_p6 }
 0x2d9   : > { %1736 = shalt.err (!%p1733_p3)
}
 0x2da   : > { %1478 = dma.vmem_to_hbm [thread:$0]  (%p2372_p0), %s2203_s28, 512, %s2220_s25, %s2224_s21, %s1826_s1, %s1826_s1, %s1827_s24  }
 0x2db   : > { %s418_s8 = scalar_lea.vmem [#allocation11], %s2105_s19  ;;  %s2286_s25 = scalar_lea.hbm %s2341_s5, %s2206_s16 }
 0x2dc   : > { %s1131_s30 = sshll.u32 %s418_s8, 4  ;;  %s1108_s21 = scalar_lea.sflag [#allocation5], %s2102_s10  ;;  %s2279_s30 = int_to_ptr.vmem [resolvable:$true] %s1131_s30 }
 0x2dd   : > { %s1737_s17 = scalar_lea.vmem %s2279_s30, 512  ;;  %s1829_s18 = smov [#allocation11]  }
 0x2de   : > { %p1738_p5 = scmp.ne.s32.totalorder %s2279_s30, %s1737_s17  ;;  %s1741_s11 = sshll.u32 %s1829_s18, 4  ;;  %s1742_s11 = int_to_ptr.vmem [resolvable:$false] %s1741_s11 }
 0x2df   : > { %s1743_s9 = scalar_lea.vmem %s1742_s11, 1024  ;;  %p1744_p9 = scmp.lt.s32.totalorder %s2279_s30, %s1742_s11 }
 0x2e0   : > { %p1739_p1 = pnand %p1738_p5, %p2372_p0  ;;  %p1745_p12 = scmp.lt.s32.totalorder %s1743_s9, %s1737_s17 }
 0x2e2   : > { %p1740_p7 = pneg %p1739_p1  ;;  %p1746_p2 = por %p1745_p12, %p1744_p9 }
 0x2e4   : > { %p1747_p6 = pnand %p1746_p2, %p1740_p7 }
 0x381   : > { %v880_v0 = vpop.f32.mrb[4].mxu0 }
 0x382   : > { %1103 = vst.msk [vmem:[%s418_s8] sm:$0xff] %vm453_vm1, %v880_v0  ;;  %v1452_v7 = vpop.f32.mrb[5].mxu0 }
 0x385   : > { %v953_v8 = vpop.f32.mrb[4].mxu1 }
 0x386   : > { %1104 = vst.msk [vmem:[%s418_s8 + $0x8] sm:$0xff] %vm453_vm1, %v953_v8  ;;  %v1026_v9 = vpop.f32.mrb[6].mxu0  ;;  %v1457_v10 = vpop.f32.mrb[5].mxu1 }
 0x387   : > { %1105 = vst.msk [vmem:[%s418_s8 + $0x10] sm:$0xff] %vm453_vm1, %v1026_v9  ;;  %v1462_v11 = vpop.f32.mrb[7].mxu0 }
 0x389   : > { %v1099_v12 = vpop.f32.mrb[6].mxu1 }
 0x38a   : > { %1106 = vst.msk [vmem:[%s418_s8 + $0x18] sm:$0xff] %vm453_vm1, %v1099_v12  ;;  %v1467_v13 = vpop.f32.mrb[7].mxu1 }
 0x38b   : > { %1750 = shalt.err (!%p1747_p6)
}
 0x38c   : > { %s1751_s16 = scalar_lea.hbm %s2286_s25, 512  ;;  %s1755_s20 = scalar_lea.hbm %s2341_s5, 1024 }
 0x38d   : > { %p1752_p13 = scmp.ne.s32.totalorder %s2286_s25, %s1751_s16  ;;  %p1756_p11 = scmp.lt.u32.totalorder %s2286_s25, %s2341_s5 }
 0x38e   : > { %p1757_p4 = scmp.lt.u32.totalorder %s1755_s20, %s1751_s16  ;;  %p1759_p5 = scmp.lt.u32.totalorder %s1751_s16, %s2286_s25 }
 0x38f   : > { %p1753_p8 = pnand %p1752_p13, %p2372_p0 }
 0x390   : > { %p1758_p3 = por %p1757_p4, %p1756_p11 }
 0x391   : > { %p1754_p10 = pneg %p1753_p8 }
 0x392   : > { %p1760_p1 = por %p1759_p5, %p1758_p3 }
 0x394   : > { %p1761_p7 = pnand %p1760_p1, %p1754_p10 }
 0x396   : > { %1764 = shalt.err (!%p1761_p7)
}
 0x397   : > { %1476 = dma.vmem_to_hbm [thread:$0]  (%p2372_p0), %s2279_s30, 512, %s2286_s25, %s1108_s21, %s1826_s1, %s1826_s1, %s1827_s24  }
 0x398 PF: > { %s1178_s15 = sand.u32 1, %s1803_s26   ;;  %p2373_p9 = scmp.ne.s32.totalorder %s2361_s14, 0 }
 0x399   : > { %p2374_p12 = scmp.ge.s32.totalorder %s1815_s29, 2  ;;  %s1179_s12 = scalar_lea.sflag [#allocation5], %s1178_s15 }
 0x39b   : > { %p1496_p2 = pnand %p2374_p12, %p2373_p9 }
 0x39d   : > { %1794 = dma.done.wait (!%p1496_p2), %s1179_s12, 512  }
 0x39e   : > { %1796 = vsyncadd (!%p1496_p2), %s1179_s12, 4294966784  ;;  %s2375_s13 = sadd.s32 4294967294, %s1815_s29  }
 0x39f   : > { %s1187_s8 = sand.u32 1, %s2375_s13  }
 0x3a0   : > { %s1188_s28 = scalar_lea.sflag [#allocation13], %s1187_s8 }
 0x3a1   : > { %1798 = dma.done.wait (!%p1496_p2), %s1188_s28, 1024  }
 0x3a2   : > { %1800 = vsyncadd (!%p1496_p2), %s1188_s28, 4294966272  ;;  %s2376_s29 = sld [smem:[#allocation21_spill]]  ;;  %s2377_s10 = sld [smem:[#allocation20_spill]] }
 0x3a3   : > { %s2378_s28 = sld [smem:[#allocation22_spill]]  ;;  %s2379_s26 = smov %s1807_s27 }
 0x3a8   : > { %p31_p0 = scmp.ge.s32.totalorder %s2376_s29, 4   ;;  %s2380_s27 = smov %s2377_s10 }
 0x3aa   :  { %33 = sbr.rel (!%p31_p0) target bundleno = 15 (0xf), region = 154 }
 0x3b1   :  { %1202 = vsyncpa [#allocation4], 1 }
 0x3b2   :  { %1204 = vsyncpa [#allocation4 + $0x1], 1 }
 0x3b3   :  { %1205 = vsyncpa [#allocation7], 1 }
 0x3b4   :  { %1207 = vsyncpa [#allocation7 + $0x1], 1 }
 0x3b5   :  { %1208 = vsyncpa [#allocation10], 1 }
 0x3b6   :  { %1210 = vsyncpa [#allocation10 + $0x1], 1 }
 0x3b7   :  { %1211 = vsyncpa [#allocation5], 1 }
 0x3b8   :  { %1213 = vsyncpa [#allocation5 + $0x1], 1 }
 0x3b9   :  { %1214 = vsyncpa [#allocation13], 1 }
 0x3ba   :  { %1216 = vsyncpa [#allocation13 + $0x1], 1 }

</bundles_post_ra>
